<compile_context>
chip_gen: v6e
topology: v6e:2x2x1
jax: 0.10.0
libtpu: 0.0.40
codegen_flags: <defaults>
</compile_context>

<pallas_src>
import jax
import jax.numpy as jnp
from jax.experimental import pallas as pl
from jax.experimental.pallas import tpu as pltpu


# ---------------------------------------------------------------------------
# Kernels
# ---------------------------------------------------------------------------
def _se_kernel_bcast(x_ref, se_ref, w1_ref, b1_ref, w2_ref, b2_ref, o_ref,
                     gate_ref):
    """Classic SE: x_se is (B, C, 1).  Gate computed once per batch (j == 0)
    into a VMEM scratch and reused for every pixel tile of that batch."""
    @pl.when(pl.program_id(1) == 0)
    def _():
        se = se_ref[0].astype(w1_ref.dtype)                       # (C, 1)
        h = jnp.dot(w1_ref[...], se,
                    preferred_element_type=jnp.float32) + b1_ref[...]
        h = jnp.maximum(h, 0.0).astype(w2_ref.dtype)              # ReLU
        z = jnp.dot(w2_ref[...], h,
                    preferred_element_type=jnp.float32) + b2_ref[...]
        gate_ref[...] = jax.nn.sigmoid(z)                         # (C, 1) f32
    # Gating multiply in the streaming dtype; (C,1) broadcasts across lanes.
    o_ref[0] = x_ref[0] * gate_ref[...].astype(x_ref.dtype)


def _se_kernel_full(x_ref, se_ref, w1_ref, b1_ref, w2_ref, b2_ref, o_ref):
    """General case: x_se has full spatial extent -> gate is per-pixel."""
    se = se_ref[0].astype(w1_ref.dtype)                           # (C, TP)
    h = jnp.dot(w1_ref[...], se,
                preferred_element_type=jnp.float32) + b1_ref[...]
    h = jnp.maximum(h, 0.0).astype(w2_ref.dtype)                  # ReLU
    z = jnp.dot(w2_ref[...], h,
                preferred_element_type=jnp.float32) + b2_ref[...]
    gate = jax.nn.sigmoid(z)                                      # (C, TP) f32
    o_ref[0] = x_ref[0] * gate.astype(x_ref.dtype)


# ---------------------------------------------------------------------------
# VMEM-aware pixel-tile selection
# ---------------------------------------------------------------------------
def _vmem_budget():
    """(scoped vmem_limit_bytes, working-set budget) for the current chip."""
    try:
        vmem_phys = int(pltpu.get_tpu_info().vmem_capacity_bytes)
    except Exception:
        vmem_phys = 128 << 20
    # 64 MiB scoped limit on 128-MiB parts (v5e/v6e), 32 MiB on v7x's 64 MiB.
    vmem_limit = max(32 << 20, min(vmem_phys // 2, 64 << 20))
    # Leave headroom for compiler-internal scratch / pipelining machinery.
    budget = (vmem_limit * 3) // 4
    return vmem_limit, budget


def _pick_pixel_tile(P, C, itemsize, w_itemsize, n_streams, budget_bytes):
    """Largest 128-multiple pixel tile whose TRUE working set fits the budget:
    double-buffered streaming blocks (x in + out, + se when full-spatial) plus
    the VMEM-resident (C,C) weights and biases."""
    cap = max(128, ((P + 127) // 128) * 128)           # no point exceeding P
    weights_resident = 2 * C * C * w_itemsize + 4 * C * 4
    best = 128
    for tp in (32768, 16384, 8192, 4096, 2048, 1024, 512, 256, 128):
        working = 2 * n_streams * C * tp * itemsize + weights_resident
        if working <= budget_bytes:
            best = tp
            break
    return min(best, cap)


# ---------------------------------------------------------------------------
# SELayer forward (NCHW in / NCHW out, matching the PyTorch module)
# ---------------------------------------------------------------------------
def se_layer_forward(x, x_se, params, *, pixel_tile=None):
    """x: (B, C, H, W).  x_se: (B, C, 1, 1) (classic SE) or (B, C, H, W)."""
    B, C, H, W = x.shape
    P = H * W
    Bs, Cs, Hs, Ws = x_se.shape
    assert (Bs, Cs) == (B, C), "x_se batch/channels must match x"
    assert (Hs, Ws) in ((1, 1), (H, W)), "x_se spatial must be (1,1) or match x"
    Pse = Hs * Ws
    full_spatial = Pse != 1

    itemsize = jnp.dtype(x.dtype).itemsize
    # Keep big (C,C) weights as bf16 so they don't starve VMEM on 64-MiB parts.
    w_dtype = jnp.bfloat16 if C >= 1024 else jnp.float32
    w_itemsize = jnp.dtype(w_dtype).itemsize

    vmem_limit, budget = _vmem_budget()
    if pixel_tile is None:
        TP = _pick_pixel_tile(P, C, itemsize, w_itemsize,
                              n_streams=3 if full_spatial else 2,
                              budget_bytes=budget)
    else:
        assert pixel_tile % 128 == 0, "pixel_tile must be a multiple of 128"
        TP = pixel_tile

    n_tiles = pl.cdiv(P, TP)
    P_pad = n_tiles * TP

    # Pure reshape of NCHW (no transpose, no extra HBM pass); pad pixel axis
    # to a 128-multiple strip so every store is a full unmasked 128-lane vst.
    x3 = x.reshape(B, C, P)
    se3 = x_se.reshape(B, C, Pse)
    if P_pad != P:
        x3 = jnp.pad(x3, ((0, 0), (0, 0), (0, P_pad - P)))
        if full_spatial:
            se3 = jnp.pad(se3, ((0, 0), (0, 0), (0, P_pad - P)))

    # 1x1 conv weights (C_out, C_in, 1, 1) -> (C_out, C_in); biases as columns.
    w1 = params["w_reduce"].reshape(C, C).astype(w_dtype)
    b1 = params["b_reduce"].reshape(C, 1).astype(jnp.float32)
    w2 = params["w_expand"].reshape(C, C).astype(w_dtype)
    b2 = params["b_expand"].reshape(C, 1).astype(jnp.float32)

    const = lambda b, j: (0, 0)       # weights/biases: DMA'd once, VMEM-resident
    x_spec = pl.BlockSpec((1, C, TP), lambda b, j: (b, 0, j))
    o_spec = pl.BlockSpec((1, C, TP), lambda b, j: (b, 0, j))
    w_spec = pl.BlockSpec((C, C), const)
    b_spec = pl.BlockSpec((C, 1), const)

    if full_spatial:
        kernel = _se_kernel_full
        se_spec = pl.BlockSpec((1, C, TP), lambda b, j: (b, 0, j))
        scratch = []
        # Every grid step independent -> both axes shard across megacore TCs.
        dims = ("parallel", "parallel")
    else:
        kernel = _se_kernel_bcast
        se_spec = pl.BlockSpec((1, C, 1), lambda b, j: (b, 0, 0))
        scratch = [pltpu.VMEM((C, 1), jnp.float32)]
        # Gate scratch is written at j == 0 and reused for j > 0, so the pixel
        # axis MUST be 'arbitrary'; batch stays 'parallel' for megacore.
        dims = ("parallel", "arbitrary")

    out = pl.pallas_call(
        kernel,
        out_shape=jax.ShapeDtypeStruct((B, C, P_pad), x.dtype),
        grid_spec=pltpu.PrefetchScalarGridSpec(
            num_scalar_prefetch=0,
            grid=(B, n_tiles),
            in_specs=[x_spec, se_spec, w_spec, b_spec, w_spec, b_spec],
            out_specs=o_spec,
            scratch_shapes=scratch),
        compiler_params=pltpu.CompilerParams(
            dimension_semantics=dims,
            vmem_limit_bytes=vmem_limit),
    )(x3, se3, w1, b1, w2, b2)

    if P_pad != P:
        out = out[:, :, :P]
    return out.reshape(B, C, H, W)


# ---------------------------------------------------------------------------
# Pure-JAX reference for correctness checking
# ---------------------------------------------------------------------------
def se_layer_reference(x, x_se, params):
    C = x.shape[1]
    w1 = params["w_reduce"].reshape(C, C).astype(jnp.float32)
    b1 = params["b_reduce"].astype(jnp.float32)
    w2 = params["w_expand"].reshape(C, C).astype(jnp.float32)
    b2 = params["b_expand"].astype(jnp.float32)
    s = jnp.einsum("oc,bchw->bohw", w1, x_se.astype(jnp.float32))
    s = jnp.maximum(s + b1[None, :, None, None], 0.0)
    s = jnp.einsum("oc,bchw->bohw", w2, s) + b2[None, :, None, None]
    return (x.astype(jnp.float32) * jax.nn.sigmoid(s)).astype(x.dtype)


if __name__ == "__main__":
    key = jax.random.PRNGKey(0)
    k = jax.random.split(key, 8)

    # Small shapes consistent with the module (SELayer keeps channel count).
    B, C, H, W = 2, 16, 32, 32
    x = jax.random.normal(k[0], (B, C, H, W), jnp.float32)
    x_se = jax.random.normal(k[1], (B, C, 1, 1), jnp.float32)

    params = {
        # nn.Conv2d(channels, channels, 1) weight layout: (C_out, C_in, 1, 1)
        "w_reduce": 0.2 * jax.random.normal(k[2], (C, C, 1, 1), jnp.float32),
        "b_reduce": 0.1 * jax.random.normal(k[3], (C,), jnp.float32),
        "w_expand": 0.2 * jax.random.normal(k[4], (C, C, 1, 1), jnp.float32),
        "b_expand": 0.1 * jax.random.normal(k[5], (C,), jnp.float32),
    }

    # Case 1: classic SE squeeze input (the way SELayer is used in lss.py),
    # auto tile selection (single 1024-lane strip here).
    out = jax.block_until_ready(se_layer_forward(x, x_se, params))
    ref = jax.block_until_ready(se_layer_reference(x, x_se, params))
    assert out.shape == (B, C, H, W), out.shape
    assert jnp.allclose(out, ref, atol=1e-3, rtol=1e-3), "mismatch (SE squeeze)"

    # Case 2: classic SE with a small explicit tile -> exercises the per-batch
    # gate-scratch hoist being reused across j > 0 pixel tiles.
    out2 = jax.block_until_ready(se_layer_forward(x, x_se, params, pixel_tile=256))
    assert jnp.allclose(out2, ref, atol=1e-3, rtol=1e-3), "mismatch (gate reuse)"

    # Case 3: x_se with full spatial extent (general forward semantics),
    # multi-tile to exercise the per-pixel gate path.
    x_se_full = jax.random.normal(k[6], (B, C, H, W), jnp.float32)
    out3 = jax.block_until_ready(se_layer_forward(x, x_se_full, params, pixel_tile=256))
    ref3 = jax.block_until_ready(se_layer_reference(x, x_se_full, params))
    assert jnp.allclose(out3, ref3, atol=1e-3, rtol=1e-3), "mismatch (full-spatial)"

    # Case 4: non-128-multiple spatial size -> exercises pixel-axis padding.
    Hs_, Ws_ = 10, 10
    xp = jax.random.normal(k[7], (B, C, Hs_, Ws_), jnp.float32)
    xp_se = jax.random.normal(k[1], (B, C, 1, 1), jnp.float32)
    out4 = jax.block_until_ready(se_layer_forward(xp, xp_se, params))
    ref4 = jax.block_until_ready(se_layer_reference(xp, xp_se, params))
    assert out4.shape == (B, C, Hs_, Ws_), out4.shape
    assert jnp.allclose(out4, ref4, atol=1e-3, rtol=1e-3), "mismatch (padded P)"

    print("KERNEL_OK")
</pallas_src>

<mosaic_0001>
module attributes {stable_mosaic.version = 11 : i64} {
  func.func @_se_kernel_bcast(%arg0: i32, %arg1: i32, %arg2: memref<1x16x1024xf32, #tpu.memory_space<vmem>>, %arg3: memref<1x16x1xf32, #tpu.memory_space<vmem>>, %arg4: memref<16x16xf32, #tpu.memory_space<vmem>>, %arg5: memref<16x1xf32, #tpu.memory_space<vmem>>, %arg6: memref<16x16xf32, #tpu.memory_space<vmem>>, %arg7: memref<16x1xf32, #tpu.memory_space<vmem>>, %arg8: memref<1x16x1024xf32, #tpu.memory_space<vmem>>, %arg9: memref<16x1xf32, #tpu.memory_space<vmem>>) attributes {dimension_semantics = [#tpu.dimension_semantics<parallel>, #tpu.dimension_semantics<arbitrary>], iteration_bounds = array<i64: 2, 1>, scalar_prefetch = 0 : i64, scratch_operands = 1 : i64, tpu.core_type = #tpu.core_type<tc>, window_params = [{transform_indices = @transform_0, window_bounds = array<i64: 1, 16, 1024>}, {transform_indices = @transform_1, window_bounds = array<i64: 1, 16, 1>}, {pipeline_mode = #tpu.pipeline_mode<synchronous>, transform_indices = @transform_2, window_bounds = array<i64: 16, 16>}, {pipeline_mode = #tpu.pipeline_mode<synchronous>, transform_indices = @transform_3, window_bounds = array<i64: 16, 1>}, {pipeline_mode = #tpu.pipeline_mode<synchronous>, transform_indices = @transform_4, window_bounds = array<i64: 16, 16>}, {pipeline_mode = #tpu.pipeline_mode<synchronous>, transform_indices = @transform_5, window_bounds = array<i64: 16, 1>}, {transform_indices = @transform_6, window_bounds = array<i64: 1, 16, 1024>}]} {
    %c0_i32 = arith.constant 0 : i32
    %0 = arith.cmpi eq, %arg1, %c0_i32 : i32
    %1 = arith.extui %0 : i1 to i32
    %c0_i32_0 = arith.constant 0 : i32
    %2 = arith.cmpi ne, %1, %c0_i32_0 : i32
    scf.if %2 {
      %c0_8 = arith.constant 0 : index
      %c0_9 = arith.constant 0 : index
      %c0_10 = arith.constant 0 : index
      %11 = vector.load %arg3[%c0_8, %c0_9, %c0_10] : memref<1x16x1xf32, #tpu.memory_space<vmem>>, vector<1x16x1xf32>
      %12 = vector.shape_cast %11 : vector<1x16x1xf32> to vector<16x1xf32>
      %c0_11 = arith.constant 0 : index
      %c0_12 = arith.constant 0 : index
      %13 = vector.load %arg4[%c0_11, %c0_12] : memref<16x16xf32, #tpu.memory_space<vmem>>, vector<16x16xf32>
      %cst = arith.constant dense<0.000000e+00> : vector<16x1xf32>
      %14 = tpu.matmul %13, %12, %cst {dimension_numbers = #tpu.dot_dimension_numbers<[1], [0], [0], [1], [0, 0, 1, 1], [], []>} : vector<16x16xf32>, vector<16x1xf32>, vector<16x1xf32> -> vector<16x1xf32>
      %c0_13 = arith.constant 0 : index
      %c0_14 = arith.constant 0 : index
      %15 = vector.load %arg5[%c0_13, %c0_14] : memref<16x1xf32, #tpu.memory_space<vmem>>, vector<16x1xf32>
      %16 = arith.addf %14, %15 : vector<16x1xf32>
      %cst_15 = arith.constant 0.000000e+00 : f32
      %17 = vector.broadcast %cst_15 : f32 to vector<16x1xf32>
      %18 = arith.maximumf %16, %17 : vector<16x1xf32>
      %c0_16 = arith.constant 0 : index
      %c0_17 = arith.constant 0 : index
      %19 = vector.load %arg6[%c0_16, %c0_17] : memref<16x16xf32, #tpu.memory_space<vmem>>, vector<16x16xf32>
      %cst_18 = arith.constant dense<0.000000e+00> : vector<16x1xf32>
      %20 = tpu.matmul %19, %18, %cst_18 {dimension_numbers = #tpu.dot_dimension_numbers<[1], [0], [0], [1], [0, 0, 1, 1], [], []>} : vector<16x16xf32>, vector<16x1xf32>, vector<16x1xf32> -> vector<16x1xf32>
      %c0_19 = arith.constant 0 : index
      %c0_20 = arith.constant 0 : index
      %21 = vector.load %arg7[%c0_19, %c0_20] : memref<16x1xf32, #tpu.memory_space<vmem>>, vector<16x1xf32>
      %22 = arith.addf %20, %21 : vector<16x1xf32>
      %23 = arith.negf %22 : vector<16x1xf32>
      %24 = math.exp %23 : vector<16x1xf32>
      %cst_21 = arith.constant 1.000000e+00 : f32
      %25 = vector.broadcast %cst_21 : f32 to vector<16x1xf32>
      %26 = arith.addf %25, %24 : vector<16x1xf32>
      %27 = arith.divf %25, %26 : vector<16x1xf32>
      %c0_22 = arith.constant 0 : index
      %c0_23 = arith.constant 0 : index
      %28 = vector.load %arg9[%c0_22, %c0_23] : memref<16x1xf32, #tpu.memory_space<vmem>>, vector<16x1xf32>
      tpu.vector_store %arg9[%c0_22, %c0_23], %27 {strides = array<i32>} : memref<16x1xf32, #tpu.memory_space<vmem>>, vector<16x1xf32>,
    } else {
    }
    %c0 = arith.constant 0 : index
    %c0_1 = arith.constant 0 : index
    %c0_2 = arith.constant 0 : index
    %3 = vector.load %arg2[%c0, %c0_1, %c0_2] : memref<1x16x1024xf32, #tpu.memory_space<vmem>>, vector<1x16x1024xf32>
    %4 = vector.shape_cast %3 : vector<1x16x1024xf32> to vector<16x1024xf32>
    %c0_3 = arith.constant 0 : index
    %c0_4 = arith.constant 0 : index
    %5 = vector.load %arg9[%c0_3, %c0_4] : memref<16x1xf32, #tpu.memory_space<vmem>>, vector<16x1xf32>
    %6 = vector.broadcast %5 : vector<16x1xf32> to vector<16x1024xf32>
    %7 = arith.mulf %4, %6 : vector<16x1024xf32>
    %c0_5 = arith.constant 0 : index
    %c0_6 = arith.constant 0 : index
    %c0_7 = arith.constant 0 : index
    %8 = vector.load %arg8[%c0_5, %c0_6, %c0_7] : memref<1x16x1024xf32, #tpu.memory_space<vmem>>, vector<1x16x1024xf32>
    %9 = vector.shape_cast %8 : vector<1x16x1024xf32> to vector<16x1024xf32>
    %10 = vector.shape_cast %7 : vector<16x1024xf32> to vector<1x16x1024xf32>
    tpu.vector_store %arg8[%c0_5, %c0_6, %c0_7], %10 {strides = array<i32>} : memref<1x16x1024xf32, #tpu.memory_space<vmem>>, vector<1x16x1024xf32>,
    return
  }
  func.func @transform_0(%arg0: i32, %arg1: i32) -> (i32, i32, i32) {
    %c0_i32 = arith.constant 0 : i32
    %c0_i32_0 = arith.constant 0 : i32
    return %arg0, %c0_i32, %arg1 : i32, i32, i32
  }
  func.func @transform_1(%arg0: i32, %arg1: i32) -> (i32, i32, i32) {
    %c0_i32 = arith.constant 0 : i32
    %c0_i32_0 = arith.constant 0 : i32
    %c0_i32_1 = arith.constant 0 : i32
    return %arg0, %c0_i32, %c0_i32_0 : i32, i32, i32
  }
  func.func @transform_2(%arg0: i32, %arg1: i32) -> (i32, i32) {
    %c0_i32 = arith.constant 0 : i32
    %c0_i32_0 = arith.constant 0 : i32
    %c0_i32_1 = arith.constant 0 : i32
    return %c0_i32, %c0_i32_0 : i32, i32
  }
  func.func @transform_3(%arg0: i32, %arg1: i32) -> (i32, i32) {
    %c0_i32 = arith.constant 0 : i32
    %c0_i32_0 = arith.constant 0 : i32
    %c0_i32_1 = arith.constant 0 : i32
    return %c0_i32, %c0_i32_0 : i32, i32
  }
  func.func @transform_4(%arg0: i32, %arg1: i32) -> (i32, i32) {
    %c0_i32 = arith.constant 0 : i32
    %c0_i32_0 = arith.constant 0 : i32
    %c0_i32_1 = arith.constant 0 : i32
    return %c0_i32, %c0_i32_0 : i32, i32
  }
  func.func @transform_5(%arg0: i32, %arg1: i32) -> (i32, i32) {
    %c0_i32 = arith.constant 0 : i32
    %c0_i32_0 = arith.constant 0 : i32
    %c0_i32_1 = arith.constant 0 : i32
    return %c0_i32, %c0_i32_0 : i32, i32
  }
  func.func @transform_6(%arg0: i32, %arg1: i32) -> (i32, i32, i32) {
    %c0_i32 = arith.constant 0 : i32
    %c0_i32_0 = arith.constant 0 : i32
    return %arg0, %c0_i32, %arg1 : i32, i32, i32
  }
}

</mosaic_0001>

<bundles_post_ra>
// kernel: tpu_custom_call.1
= control target key start
LH: loop header
LB: loop body
LE: loop exit
PB: predicated region body
PF: predicated region fallthrough
CT: control target
= control target key end

     0   :  { %11 = vsyncpa [#allocation4], 0  ;;  %s1175_s0 = inlined_call_operand.hbm [shape: f32[2,16,1024], index: 0, kind: input, shape index: {}]   ;;  %s1176_s1 = inlined_call_operand.vmem [shape: f32[2,16,1], index: 1, kind: input, shape index: {}]   ;;  %s1177_s2 = inlined_call_operand.vmem [shape: f32[16,16], index: 2, kind: input, shape index: {}]   ;;  %s1178_s3 = inlined_call_operand.vmem [shape: f32[16,1], index: 3, kind: input, shape index: {}]   ;;  %s1179_s4 = inlined_call_operand.vmem [shape: f32[16,16], index: 4, kind: input, shape index: {}]   ;;  %s1180_s5 = inlined_call_operand.vmem [shape: f32[16,1], index: 5, kind: input, shape index: {}]   ;;  %s1181_s6 = inlined_call_operand.hbm [shape: f32[2,16,1024], index: 6, kind: output, shape index: {}]  }
   0x1   :  { %13 = vsyncpa [#allocation4 + $0x1], 0 }
   0x2   :  { %14 = vsyncpa [#allocation5], 0 }
   0x3   :  { %16 = vsyncpa [#allocation5 + $0x1], 0  ;;  %s955_s21 = smov 0   ;;  %s957_s22 = smov 0  }
   0x4   :  { %s959_s23 = smov 0   ;;  %s961_s24 = smov 0  }
   0x5   :  { %s963_s25 = smov 0   ;;  %s965_s26 = smov 0  }
   0x6 LB: > { %s679_s27 = sadd.s32 4294967295, %s911_s26   ;;  %s680_s28 = sadd.s32 4294967294, %s911_s26   ;;  %s911_s26 = sphi %s965_s26, %s22_s26   ;;  %s907_s25 = sphi %s963_s25, %s1192_s25   ;;  %s903_s24 = sphi %s961_s24, %s1191_s24   ;;  %s899_s23 = sphi %s959_s23, %s1190_s23   ;;  %s895_s22 = sphi %s957_s22, %s1189_s22   ;;  %s891_s21 = sphi %s955_s21, %s1188_s21  }
   0x7   : > { %s34_s29 = sadd.s32 1, %s907_s25  ;;  %s43_s30 = sadd.s32 1, %s899_s23 }
   0x8   : > { %p36_p0 = scmp.ge.s32.totalorder %s34_s29, 2  ;;  %p50_p1 = scmp.ne.s32.totalorder %s899_s23, %s895_s22 }
   0x9   : > { %p51_p2 = scmp.eq.s32.totalorder %s911_s26, 0  ;;  %p56_p3 = scmp.ne.s32.totalorder %s895_s22, %s891_s21 }
   0xa   : > { %s1194_s29 = smov (%p36_p0, %s34_s29), 0  ;;  %p57_p5 = scmp.eq.s32.totalorder %s679_s27, 0 }
   0xb   : > { %p996_p4 = por %p51_p2, %p50_p1  ;;  %s38_s8 = ssub.s32 %s907_s25, %s1194_s29 }
   0xc   : > { %p192_p6 = scmp.eq.s32.totalorder %s679_s27, 1  ;;  %p41_p7 = scmp.eq.s32.totalorder %s38_s8, 0 }
   0xd   : > { %p1002_p8 = por %p57_p5, %p56_p3  ;;  %p198_p10 = scmp.eq.s32.totalorder %s680_s28, 1 }
   0xe   : > { %p1006_p9 = por %p192_p6, %p50_p1  ;;  %p739_p13 = scmp.lt.s32.totalorder %s911_s26, 2 }
   0xf   : > { %s1011_s11 = scalar_select %p41_p7, %s899_s23, %s43_s30  }
  0x10   : > { %p1013_p11 = por %p198_p10, %p56_p3  ;;  %s230_s13 = sand.u32 1, %s899_s23  }
  0x11   : > { %s683_s14 = sshll.u32 %s230_s13, 7  ;;  %s702_s15 = sshll.u32 %s907_s25, 11 }
  0x12   : > { %s242_s18 = scalar_lea.hbm %s1175_s0, %s702_s15  ;;  %s234_s19 = scalar_lea.vmem [#allocation3], %s683_s14 }
  0x13   : > { %s243_s20 = sshll.u32 %s234_s19, 4  ;;  %p1026_p0 = pnand %p739_p13, %p996_p4  ;;  %s244_s20 = int_to_ptr.vmem [resolvable:$true] %s243_s20 }
  0x14   : > { %p686_p1 = scmp.ge.s32.totalorder %s911_s26, 1  ;;  %s231_s28 = scalar_lea.sflag [#allocation4], %s230_s13 }
  0x15   : > { %p805_p2 = pneg %p1026_p0  ;;  %s816_s30 = scalar_lea.vmem %s244_s20, 2048 }
  0x16   : > { %p817_p3 = scmp.ne.s32.totalorder %s244_s20, %s816_s30  ;;  %s913_s8 = smov [#allocation3]  }
  0x17   : > { %s821_s16 = sshll.u32 %s913_s8, 4  ;;  %s822_s16 = int_to_ptr.vmem [resolvable:$false] %s821_s16 }
  0x18   : > { %p819_p5 = pnand %p817_p3, %p805_p2  ;;  %s823_s14 = scalar_lea.vmem %s822_s16, 4096 }
  0x19   : > { %p824_p7 = scmp.lt.s32.totalorder %s244_s20, %s822_s16  ;;  %p825_p10 = scmp.lt.s32.totalorder %s823_s14, %s816_s30 }
  0x1a   : > { %p820_p6 = pneg %p819_p5 }
  0x1b   : > { %p826_p12 = por %p825_p10, %p824_p7 }
  0x1d   : > { %p827_p4 = pnand %p826_p12, %p820_p6 }
  0x1f   : > { %830 = shalt.err (!%p827_p4)
}
  0x20   : > { %s914_s7 = smov 1024   ;;  %s915_s13 = smov 64  }
  0x21   : > { %734 = dma.hbm_to_vmem [thread:$0]  (!%p1026_p0), %s242_s18, 2048, %s244_s20, %s231_s28, %s914_s7, %s914_s7, %s915_s13  }
  0x22   : > { %p259_p13 = scmp.lt.s32.totalorder %s911_s26, 3 }
  0x24   : > { %p260_p2 = pnand %p686_p1, %p259_p13 }
  0x25   : > { %s1039_s15 = sand.u32 (!%p260_p2), 1, %s895_s22  }
  0x26   : > { %263 = sbr.rel (%p260_p2) target bundleno = 640 (0x280), region = 44  ;;  %s687_s17 = sshll.u32 (!%p260_p2), %s1039_s15, 7 }
  0x27   : > { %s266_s19 = scalar_lea.sflag (!%p260_p2), [#allocation4], %s1039_s15  ;;  %s1045_s30 = scalar_lea.vmem (!%p260_p2), [#allocation3], %s687_s17 }
  0x2b   : > { %882 = dma.done.wait (%p1002_p8), %s266_s19, 2048  }
  0x2c   : > { %884 = vsyncadd (%p1002_p8), %s266_s19, 4294965248  ;;  %p304_p12 = scmp.lt.s32.totalorder %s903_s24, 1  ;;  %vm320_vm0 = vcmask 130048   ;;  %v316_v2 = vld [vmem:[%s1177_s2] sm:$0xff]  ;;  %v317_v3 = vld [vmem:[%s1177_s2 + $0x8] sm:$0xff]  ;;  %v916_v14 = vmov 0  }
  0x2d   : > { %717 = vmatprep.mubr.msk.f32.mxu0 %vm320_vm0, %v316_v2  ;;  %v404_v4 = vld [vmem:[%s1179_s4] sm:$0xff]  ;;  %v319_v5 = vld [vmem:[%s1178_s3 + $0x8] sm:$0xff]  ;;  %794 = vset.pattern.permute.xlu0 %v916_v14  ;;  %vm501_vm1 = vcmask 7168   ;;  %v504_v31 = vld [vmem:[%s1045_s30] sm:$0xff]  ;;  %s704_s19 = sshll.u32 %s903_s24, 11  ;;  %s565_s27 = scalar_lea.sflag [#allocation5], %s1039_s15 }
  0x2e   : > { %s305_s18 = scalar_select %p304_p12, %s903_s24, 1  ;;  %724 = vmatprep.mubr.msk.f32.mxu1 %vm320_vm0, %v404_v4  ;;  %v318_v7 = vld [vmem:[%s1178_s3] sm:$0xff]  ;;  %v405_v13 = vld [vmem:[%s1179_s4 + $0x8] sm:$0xff]  ;;  %v505_v32 = vld [vmem:[%s1045_s30 + $0x8] sm:$0xff] }
  0x2f   : > { %v407_v15 = vld [vmem:[%s1180_s5 + $0x8] sm:$0xff]  ;;  %v406_v17 = vld [vmem:[%s1180_s5] sm:$0xff]  ;;  %v508_v35 = vld [vmem:[%s1045_s30 + $0x20] sm:$0xff] }
  0x30   : > { %s703_s20 = sshll.u32 %s305_s18, 4  ;;  %v506_v33 = vld [vmem:[%s1045_s30 + $0x10] sm:$0xff]  ;;  %v507_v34 = vld [vmem:[%s1045_s30 + $0x18] sm:$0xff]  ;;  %v509_v36 = vld [vmem:[%s1045_s30 + $0x28] sm:$0xff]  ;;  %s1100_s18 = scalar_lea.vmem [#allocation6], %s687_s17 }
  0x31   : > { %s308_s8 = scalar_lea.vmem %s1176_s1, %s703_s20  ;;  %v510_v37 = vld [vmem:[%s1045_s30 + $0x30] sm:$0xff]  ;;  %v511_v38 = vld [vmem:[%s1045_s30 + $0x38] sm:$0xff]  ;;  %v512_v44 = vld [vmem:[%s1045_s30 + $0x40] sm:$0xff]  ;;  %s580_s20 = sshll.u32 %s1100_s18, 4  ;;  %s1119_s20 = int_to_ptr.vmem [resolvable:$true] %s580_s20 }
  0x32   : > { %v315_v0 = vld [vmem:[%s308_s8 + $0x8] sm:$0xff]  ;;  %v314_v1 = vld [vmem:[%s308_s8] sm:$0xff]  ;;  %v513_v45 = vld [vmem:[%s1045_s30 + $0x48] sm:$0xff]  ;;  %s831_s28 = scalar_lea.vmem %s1119_s20, 2048  ;;  %s917_s8 = smov [#allocation6]  }
  0x33   : > { %713 = vmatprep.subr.mxu0 %v315_v0  ;;  %v514_v50 = vld [vmem:[%s1045_s30 + $0x50] sm:$0xff]  ;;  %v515_v51 = vld [vmem:[%s1045_s30 + $0x58] sm:$0xff]  ;;  %v516_v52 = vld [vmem:[%s1045_s30 + $0x60] sm:$0xff]  ;;  %p832_p8 = scmp.ne.s32.totalorder %s1119_s20, %s831_s28  ;;  %s835_s16 = sshll.u32 %s917_s8, 4  ;;  %s836_s16 = int_to_ptr.vmem [resolvable:$false] %s835_s16 }
  0x34   : > { %714 = vmatpush3.msra.mxu0 %v315_v0  ;;  %v517_v53 = vld [vmem:[%s1045_s30 + $0x68] sm:$0xff]  ;;  %v518_v54 = vld [vmem:[%s1045_s30 + $0x70] sm:$0xff]  ;;  %v519_v55 = vld [vmem:[%s1045_s30 + $0x78] sm:$0xff]  ;;  %s1117_s30 = scalar_lea.hbm %s1181_s6, %s704_s19  ;;  %s837_s14 = scalar_lea.vmem %s836_s16, 4096 }
  0x35   : > { %715 = vmatprep.subr.mxu0 %v314_v1  ;;  %p833_p0 = pnand %p832_p8, %p1006_p9  ;;  %p838_p3 = scmp.lt.s32.totalorder %s1119_s20, %s836_s16 }
  0x36   : > { %716 = vmatpush3.msra.mxu0 %v314_v1  ;;  %p839_p5 = scmp.lt.s32.totalorder %s837_s14, %s831_s28 }
  0x37   : > { %718 = vmatmul.mubr.msk.f32.vlgmr.msra.gmra.mxu0 %vm320_vm0, %v317_v3  ;;  %p834_p1 = pneg %p833_p0 }
  0x38   : > { %p840_p6 = por %p839_p5, %p838_p3 }
  0x3a   : > { %p841_p7 = pnand %p840_p6, %p834_p1 }
  0xf7   : > { %v719_v6 = vpop.f32.mrf.mxu0 }
  0xf8   : > { %v399_v8 = vadd.f32 %v719_v6, %v319_v5 }
  0xf9   : > { %v393_v9 = vpop.f32.mrf.mxu0 }
  0xfa   : > { %v403_v10 = vmax.f32 %v399_v8, 0.0  ;;  %v394_v11 = vadd.f32 %v393_v9, %v318_v7 }
  0xfc   : > { %v402_v12 = vmax.f32 %v394_v11, 0.0  ;;  %720 = vmatprep.subr.mxu1 %v403_v10 }
  0xfd   : > { %721 = vmatpush3.msra.mxu1 %v403_v10 }
  0xfe   : > { %722 = vmatprep.subr.mxu1 %v402_v12 }
  0xff   : > { %723 = vmatpush3.msra.mxu1 %v402_v12 }
 0x100   : > { %725 = vmatmul.mubr.msk.f32.vlgmr.msra.gmra.mxu1 %vm320_vm0, %v405_v13 }
 0x1c0   : > { %v726_v16 = vpop.f32.mrf.mxu1 }
 0x1c1   : > { %v486_v18 = vadd.f32 %v726_v16, %v407_v15 }
 0x1c2   : > { %v480_v19 = vpop.f32.mrf.mxu1 }
 0x1c3   : > { %v696_v20 = vmul.f32 -1.442695, %v486_v18  ;;  %v481_v21 = vadd.f32 %v480_v19, %v406_v17 }
 0x1c5   : > { %795 = vpow2.f32 %v696_v20  ;;  %v695_v22 = vmul.f32 -1.442695, %v481_v21 }
 0x1c7   : > { %797 = vpow2.f32 %v695_v22 }
 0x1d2   : > { %v796_v23 = vpop.eup %795 }
 0x1d3   : > { %v496_v24 = vadd.f32 1.0, %v796_v23 }
 0x1d4   : > { %v798_v25 = vpop.eup %797 }
 0x1d5   : > { %799 = vrcp.f32 %v496_v24  ;;  %v495_v26 = vadd.f32 1.0, %v798_v25 }
 0x1d7   : > { %801 = vrcp.f32 %v495_v26 }
 0x1e2   : > { %v800_v27 = vpop.eup %799 }
 0x1e3   : > { %503 = vst.msk [vmem:[#allocation2 + $0x8] sm:$0xff] %vm501_vm1, %v800_v27 }
 0x1e4   : > { %v802_v28 = vpop.eup %801 }
 0x1e5   : > { %502 = vst.msk [vmem:[#allocation2] sm:$0xff] %vm501_vm1, %v802_v28 }
 0x1ea   : > { %v521_v30 = vld [vmem:[#allocation2 + $0x8] sm:$0xff] }
 0x1ec   : > { %v520_v29 = vld [vmem:[#allocation2] sm:$0xff] }
 0x1ed   : > { %524 = vperm.xlu0 %794, %v520_v29  }
 0x1f1   : > { %529 = vperm.xlu0 %794, %v521_v30  }
 0x268   : > { %v525_v39 = vpop.permute.xlu0 %524 }
 0x269   : > { %v532_v40 = vmul.f32 %v525_v39, %v504_v31  ;;  %v533_v41 = vmul.f32 %v525_v39, %v505_v32  ;;  %v534_v42 = vmul.f32 %v525_v39, %v506_v33  ;;  %v535_v43 = vmul.f32 %v525_v39, %v507_v34 }
 0x26a   : > { %v536_v46 = vmul.f32 %v525_v39, %v508_v35  ;;  %v537_v47 = vmul.f32 %v525_v39, %v509_v36  ;;  %v538_v48 = vmul.f32 %v525_v39, %v510_v37  ;;  %v539_v49 = vmul.f32 %v525_v39, %v511_v38 }
 0x26b   : > { %548 = vst [vmem:[%s1100_s18] sm:$0xff] %v532_v40  ;;  %549 = vst [vmem:[%s1100_s18 + $0x8] sm:$0xff] %v533_v41 }
 0x26c   : > { %550 = vst [vmem:[%s1100_s18 + $0x10] sm:$0xff] %v534_v42  ;;  %551 = vst [vmem:[%s1100_s18 + $0x18] sm:$0xff] %v535_v43  ;;  %v530_v56 = vpop.permute.xlu0 %529 }
 0x26d   : > { %552 = vst [vmem:[%s1100_s18 + $0x20] sm:$0xff] %v536_v46  ;;  %553 = vst [vmem:[%s1100_s18 + $0x28] sm:$0xff] %v537_v47  ;;  %v540_v57 = vmul.f32 %v530_v56, %v512_v44  ;;  %v541_v58 = vmul.f32 %v530_v56, %v513_v45  ;;  %v542_v59 = vmul.f32 %v530_v56, %v514_v50 }
 0x26e   : > { %554 = vst [vmem:[%s1100_s18 + $0x30] sm:$0xff] %v538_v48  ;;  %555 = vst [vmem:[%s1100_s18 + $0x38] sm:$0xff] %v539_v49  ;;  %v543_v60 = vmul.f32 %v530_v56, %v515_v51  ;;  %v544_v61 = vmul.f32 %v530_v56, %v516_v52  ;;  %v545_v62 = vmul.f32 %v530_v56, %v517_v53 }
 0x26f   : > { %v546_v63 = vmul.f32 %v530_v56, %v518_v54  ;;  %v547_v0 = vmul.f32 %v530_v56, %v519_v55  ;;  %556 = vst [vmem:[%s1100_s18 + $0x40] sm:$0xff] %v540_v57  ;;  %557 = vst [vmem:[%s1100_s18 + $0x48] sm:$0xff] %v541_v58 }
 0x270   : > { %558 = vst [vmem:[%s1100_s18 + $0x50] sm:$0xff] %v542_v59  ;;  %559 = vst [vmem:[%s1100_s18 + $0x58] sm:$0xff] %v543_v60 }
 0x271   : > { %560 = vst [vmem:[%s1100_s18 + $0x60] sm:$0xff] %v544_v61  ;;  %561 = vst [vmem:[%s1100_s18 + $0x68] sm:$0xff] %v545_v62 }
 0x272   : > { %562 = vst [vmem:[%s1100_s18 + $0x70] sm:$0xff] %v546_v63  ;;  %563 = vst [vmem:[%s1100_s18 + $0x78] sm:$0xff] %v547_v0 }
 0x273   : > { %844 = shalt.err (!%p841_p7)
}
 0x274   : > { %s845_s9 = scalar_lea.hbm %s1117_s30, 2048  ;;  %s849_s19 = scalar_lea.hbm %s1181_s6, 4096 }
 0x275   : > { %p846_p10 = scmp.ne.s32.totalorder %s1117_s30, %s845_s9  ;;  %p850_p2 = scmp.lt.s32.totalorder %s1117_s30, %s1181_s6 }
 0x276   : > { %p851_p12 = scmp.lt.s32.totalorder %s849_s19, %s845_s9 }
 0x277   : > { %p847_p4 = pnand %p846_p10, %p1006_p9 }
 0x278   : > { %p852_p8 = por %p851_p12, %p850_p2 }
 0x279   : > { %p848_p13 = pneg %p847_p4 }
 0x27b   : > { %p853_p0 = pnand %p852_p8, %p848_p13 }
 0x27d   : > { %856 = shalt.err (!%p853_p0)
}
 0x27e   : > { %s918_s17 = smov 1024   ;;  %s919_s28 = smov 64  }
 0x27f   : > { %729 = dma.vmem_to_hbm [thread:$0]  (%p1006_p9), %s1119_s20, 2048, %s1117_s30, %s565_s27, %s918_s17, %s918_s17, %s919_s28  }
 0x280 PF: > { %s595_s8 = sand.u32 1, %s891_s21   ;;  %p1187_p1 = scmp.ge.s32.totalorder %s911_s26, 2 }
 0x281   : > { %s596_s16 = scalar_lea.sflag [#allocation5], %s595_s8 }
 0x282   : > { %p736_p3 = pnand %p1187_p1, %p1013_p11 }
 0x284   : > { %p737_p5 = pneg %p736_p3 }
 0x286   : > { %886 = dma.done.wait (%p737_p5), %s596_s16, 2048  }
 0x287   : > { %888 = vsyncadd (%p737_p5), %s596_s16, 4294965248  ;;  %s22_s26 = sadd.s32 1, %s911_s26   ;;  %s1188_s21 = smov %s895_s22 }
 0x288   : > { %p19_p6 = scmp.ge.s32.totalorder %s22_s26, 4   ;;  %s1189_s22 = smov %s899_s23 }
 0x289   : > { %s1190_s23 = smov %s1011_s11  ;;  %s1191_s24 = smov %s907_s25 }
 0x28a   : > { %s1192_s25 = smov %s1194_s29  ;;  %21 = sbr.rel (!%p19_p6) target bundleno = 6 (0x6), region = 96 }
 0x28f   :  { %601 = vsyncpa [#allocation4], 1 }
 0x290   :  { %603 = vsyncpa [#allocation4 + $0x1], 1 }
 0x291   :  { %604 = vsyncpa [#allocation5], 1 }
 0x292   :  { %606 = vsyncpa [#allocation5 + $0x1], 1 }

</bundles_post_ra>
